<compile_context>
chip_gen: v5e
topology: v5e:2x2
jax: 0.10.0
libtpu: 0.0.40
codegen_flags: <defaults>
</compile_context>

<pallas_src>
import jax
import jax.numpy as jnp
from jax.experimental import pallas as pl
from jax.experimental.pallas import tpu as pltpu


def _round_up(x, m):
    return ((x + m - 1) // m) * m


# VMEM budget for the double-buffered (input + output) blocks; kept well under
# v7x's 64 MiB per-TensorCore VMEM and the 32 MiB scoped limit we request.
_VMEM_BLOCK_BUDGET = 20 * 1024 * 1024


def _fold_weights(R, c, alpha):
    """Fold reset_map column 0 and the alpha * zs[:, 0] term into (w_eff, bias)."""
    w_eff = R[:, 0].astype(jnp.float32)
    w_eff = w_eff.at[0].add(jnp.float32(alpha))            # (Z,)
    bias = jnp.reshape(c[0].astype(jnp.float32), (1,))     # (1,)
    return w_eff, bias


def _choose_batch_tile(B, Z, tb):
    """Lane (batch) tile: multiple of 128, as large as the VMEM budget allows."""
    # 2 (double buffer) * (Z input rows + 1 output row) * 4 bytes per lane.
    cap = _VMEM_BLOCK_BUDGET // (2 * (Z + 1) * 4)
    tb_eff = max(128, (min(tb, cap) // 128) * 128)
    # Never bigger than the (128-rounded) batch itself.
    tb_eff = min(tb_eff, _round_up(B, 128))
    # Keep >= 2 grid steps when possible so "parallel" can use both v7x TCs.
    if B > 128:
        tb_eff = min(tb_eff, _round_up(pl.cdiv(B, 2), 128))
    return tb_eff


def _hdelta_kernel(w_ref, b_ref, zs_ref, out_ref):
    """out[0, :] = sum_z w[z, 0] * zs[z, :] + bias   (batch on the lane axis)."""
    # Full-tile load, broadcast multiply by the resident (Z, 1) weight column,
    # sublane reduce on the XLU, one wide lane-dense store.
    out_ref[...] = (
        jnp.sum(zs_ref[...] * w_ref[...], axis=0, keepdims=True) + b_ref[0]
    )


def _hdelta_pallas(zs_t, w_eff, bias, *, tb):
    """Pallas driver. zs_t is (Z, B) float32 with batch on the trailing axis."""
    Z, B = zs_t.shape
    tb_eff = _choose_batch_tile(B, Z, tb)
    grid = (pl.cdiv(B, tb_eff),)

    out = pl.pallas_call(
        _hdelta_kernel,
        out_shape=jax.ShapeDtypeStruct((1, B), jnp.float32),
        grid=grid,
        in_specs=[
            pl.BlockSpec((Z, 1), lambda i: (0, 0)),              # weight column, resident
            pl.BlockSpec(memory_space=pltpu.MemorySpace.SMEM),   # bias scalar
            pl.BlockSpec((Z, tb_eff), lambda i: (0, i)),         # zs tile, batch on lanes
        ],
        out_specs=pl.BlockSpec((1, tb_eff), lambda i: (0, i)),   # lane-dense output
        compiler_params=pltpu.CompilerParams(
            dimension_semantics=("parallel",),
            vmem_limit_bytes=32 * 1024 * 1024,
        ),
        cost_estimate=pl.CostEstimate(
            flops=2 * Z * B,
            transcendentals=0,
            bytes_accessed=(Z + 1) * B * 4,
        ),
    )(w_eff.reshape(Z, 1), bias, zs_t)

    # (1, B) is contiguous, so this reshape is free (no extra copy / slice pass).
    return out.reshape(B, 1)


def hdelta_explicit_forward(zs, zdots, R, c, alpha, *, tb=262144, min_pallas_batch=4096):
    """h = HDeltaExplicit.forward(zs, zdots) with linear reset_map q+ = zs @ R + c."""
    del zdots  # forward() ignores zdots in the reference module
    B, Z = zs.shape
    zs = zs.astype(jnp.float32)
    w_eff, bias = _fold_weights(R, c, alpha)

    if B < min_pallas_batch:
        # Launch + relayout overhead dominates at small B; a fused XLA matvec wins.
        return (zs @ w_eff + bias[0])[:, None]

    # TODO(synk): this transpose is one extra relayout pass over zs; producers that
    # can emit zs directly in (Z, B) layout should call hdelta_explicit_forward_zT.
    return _hdelta_pallas(zs.T, w_eff, bias, tb=tb)


def hdelta_explicit_forward_zT(zs_t, zdots, R, c, alpha, *, tb=262144):
    """Transpose-free fast path: zs_t is zs already laid out as (Z, B)."""
    del zdots
    w_eff, bias = _fold_weights(R, c, alpha)
    return _hdelta_pallas(zs_t.astype(jnp.float32), w_eff, bias, tb=tb)


def hdelta_explicit_reference(zs, R, c, alpha):
    """Pure-JAX reference: (reset_map(zs)[:, 0] + alpha * zs[:, 0])[:, None]."""
    q_plus = zs.astype(jnp.float32) @ R + c
    return (q_plus[:, 0] + alpha * zs[:, 0])[:, None]


if __name__ == "__main__":
    Z = 4  # zero-dynamics dim
    key = jax.random.PRNGKey(0)
    k_r, k_c, k1, k2, k3, k4 = jax.random.split(key, 6)

    # Deterministic synthetic reset_map parameters and barrier gain alpha.
    R = 0.3 * jax.random.normal(k_r, (Z, Z), dtype=jnp.float32)
    c = 0.1 * jax.random.normal(k_c, (Z,), dtype=jnp.float32)
    alpha = 0.5

    # Small batch, forced through the Pallas kernel (single partial block).
    B = 8
    zs = jax.random.normal(k1, (B, Z), dtype=jnp.float32)
    zdots = jax.random.normal(k2, (B, Z), dtype=jnp.float32)  # unused by forward
    h = hdelta_explicit_forward(zs, zdots, R, c, alpha, min_pallas_batch=0)
    h = jax.block_until_ready(h)
    h_ref = hdelta_explicit_reference(zs, R, c, alpha)
    assert h.shape == (B, 1), h.shape
    assert jnp.allclose(h, h_ref, atol=1e-5, rtol=1e-5), (h, h_ref)

    # Ragged batch exercising a 2-step grid with a masked partial edge block.
    B2 = 300
    zs2 = jax.random.normal(k3, (B2, Z), dtype=jnp.float32)
    zdots2 = jax.random.normal(k4, (B2, Z), dtype=jnp.float32)
    h2 = hdelta_explicit_forward(zs2, zdots2, R, c, alpha, min_pallas_batch=0)
    h2 = jax.block_until_ready(h2)
    h2_ref = hdelta_explicit_reference(zs2, R, c, alpha)
    assert h2.shape == (B2, 1), h2.shape
    assert jnp.allclose(h2, h2_ref, atol=1e-5, rtol=1e-5)

    # Small-batch XLA fallback path (default threshold) agrees as well.
    h_small = hdelta_explicit_forward(zs, zdots, R, c, alpha)
    assert jnp.allclose(h_small, h_ref, atol=1e-5, rtol=1e-5)

    print("KERNEL_OK")
</pallas_src>

<mosaic_0001>
module attributes {stable_mosaic.version = 11 : i64} {
  func.func @_hdelta_kernel(%arg0: i32, %arg1: memref<4x1xf32, #tpu.memory_space<vmem>>, %arg2: memref<1xf32, #tpu.memory_space<smem>>, %arg3: memref<4x128xf32, #tpu.memory_space<vmem>>, %arg4: memref<1x128xf32, #tpu.memory_space<vmem>>) attributes {dimension_semantics = [#tpu.dimension_semantics<parallel>], iteration_bounds = array<i64: 1>, scalar_prefetch = 0 : i64, scratch_operands = 0 : i64, tpu.core_type = #tpu.core_type<tc>, window_params = [{pipeline_mode = #tpu.pipeline_mode<synchronous>, transform_indices = @transform_0, window_bounds = array<i64: 4, 1>}, {transform_indices = @transform_1, window_bounds = array<i64: 1>}, {transform_indices = @transform_2, window_bounds = array<i64: 4, 128>}, {transform_indices = @transform_3, window_bounds = array<i64: 1, 128>}]} {
    %c0 = arith.constant 0 : index
    %c0_0 = arith.constant 0 : index
    %0 = vector.load %arg3[%c0, %c0_0] : memref<4x128xf32, #tpu.memory_space<vmem>>, vector<4x128xf32>
    %c0_1 = arith.constant 0 : index
    %c0_2 = arith.constant 0 : index
    %1 = vector.load %arg1[%c0_1, %c0_2] : memref<4x1xf32, #tpu.memory_space<vmem>>, vector<4x1xf32>
    %2 = vector.broadcast %1 : vector<4x1xf32> to vector<4x128xf32>
    %3 = arith.mulf %0, %2 : vector<4x128xf32>
    %cst = arith.constant dense<0.000000e+00> : vector<128xf32>
    %4 = vector.multi_reduction <add>, %3, %cst [0] : vector<4x128xf32> to vector<128xf32>
    %5 = vector.shape_cast %4 : vector<128xf32> to vector<1x128xf32>
    %c0_3 = arith.constant 0 : index
    %6 = memref.load %arg2[%c0_3] : memref<1xf32, #tpu.memory_space<smem>>
    %7 = vector.broadcast %6 : f32 to vector<1x128xf32>
    %8 = arith.addf %5, %7 : vector<1x128xf32>
    %c0_4 = arith.constant 0 : index
    %c0_5 = arith.constant 0 : index
    %9 = vector.load %arg4[%c0_4, %c0_5] : memref<1x128xf32, #tpu.memory_space<vmem>>, vector<1x128xf32>
    tpu.vector_store %arg4[%c0_4, %c0_5], %8 {strides = array<i32>} : memref<1x128xf32, #tpu.memory_space<vmem>>, vector<1x128xf32>,
    return
  }
  func.func @transform_0(%arg0: i32) -> (i32, i32) {
    %c0_i32 = arith.constant 0 : i32
    %c0_i32_0 = arith.constant 0 : i32
    %c0_i32_1 = arith.constant 0 : i32
    return %c0_i32, %c0_i32_0 : i32, i32
  }
  func.func @transform_1(%arg0: i32) -> i32 {
    %c0_i32 = arith.constant 0 : i32
    %c0_i32_0 = arith.constant 0 : i32
    return %c0_i32 : i32
  }
  func.func @transform_2(%arg0: i32) -> (i32, i32) {
    %c0_i32 = arith.constant 0 : i32
    %c0_i32_0 = arith.constant 0 : i32
    return %c0_i32, %arg0 : i32, i32
  }
  func.func @transform_3(%arg0: i32) -> (i32, i32) {
    %c0_i32 = arith.constant 0 : i32
    %c0_i32_0 = arith.constant 0 : i32
    return %c0_i32, %arg0 : i32, i32
  }
}

</mosaic_0001>

<bundles_post_ra>
// kernel: tpu_custom_call.1
= control target key start
LH: loop header
LB: loop body
LE: loop exit
PB: predicated region body
PF: predicated region fallthrough
CT: control target
= control target key end

     0   :  { %s115_s0 = inlined_call_operand.vmem [shape: f32[4,1], index: 0, kind: input, shape index: {}]   ;;  %s116_s1 = inlined_call_operand.<no memory space> [shape: f32[1], index: 1, kind: input, shape index: {}]   ;;  %s117_s2 = inlined_call_operand.vmem [shape: f32[4,8], index: 2, kind: input, shape index: {}]   ;;  %s118_s3 = inlined_call_operand.hbm [shape: f32[1,8], index: 3, kind: output, shape index: {}]  }
   0x1   :  { %v17_v0 = vld [vmem:[%s115_s0] sm:$0xf] }
   0x2   :  { %9 = vsyncpa [#allocation4], 0  ;;  %v81_v1 = vmov 0   ;;  %v16_v2 = vld [vmem:[%s117_s2] sm:$0xf]  ;;  %vm24_vm0 = vcmask 1043456   ;;  %v33_v11 = vstv %s116_s1 }
   0x3   :  { %54 = vset.pattern.permute.xlu0 %v81_v1  ;;  %s82_s0 = smov [#allocation3]   ;;  %s43_s21 = sshll.u32 %s118_s3, 4  ;;  %s44_s21 = int_to_ptr.hbm [resolvable:$true] %s43_s21 }
   0x4   :  { %20 = vperm.xlu0 %54, %v17_v0   ;;  %s41_s18 = sshll.u32 %s82_s0, 4  ;;  %s42_s18 = int_to_ptr.vmem [resolvable:$true] %s41_s18 }
  0x76   :  { %v21_v3 = vpop.permute.xlu0 %20 }
  0x77   :  { %v23_v4 = vmul.f32 %v21_v3, %v16_v2 }
  0x79   :  { %v25_v5 = vsel %vm24_vm0, %v23_v4, 0.0 }
  0x7a   :  { %v26_v6 = vrot.slane %v25_v5, 4 }
  0x7c   :  { %v27_v7 = vadd.f32 %v26_v6, %v25_v5 }
  0x7e   :  { %v28_v8 = vrot.slane %v27_v7, 2 }
  0x80   :  { %v29_v9 = vadd.f32 %v28_v8, %v27_v7 }
  0x82   :  { %v30_v10 = vrot.slane %v29_v9, 1 }
  0x84   :  { %v31_v12 = vadd.f32 %v30_v10, %v29_v9 }
  0x86   :  { %v34_v13 = vadd.f32 %v33_v11, %v31_v12 }
  0x88   :  { %35 = vst [vmem:[#allocation3] sm:$0x1] %v34_v13 }
  0x89   :  { %46 = dma.vmem_to_hbm [thread:$0]  %s42_s18, 16, %s44_s21, [#allocation4]  }
  0x8a   :  { %79 = dma.done.wait [#allocation4], 16  }
  0x8b   :  { %80 = vsyncadd [#allocation4], 4294967280 }
  0x8c   :  { %51 = vsyncpa [#allocation4], 1 }

</bundles_post_ra>
